<compile_context>
chip_gen: v5e
topology: v5e:2x2
jax: 0.10.0
libtpu: 0.0.40
codegen_flags: <defaults>
</compile_context>

<pallas_src>
import jax
import jax.numpy as jnp
from jax.experimental import pallas as pl
from jax.experimental.pallas import tpu as pltpu

# ----------------------------- configuration --------------------------------
B = 2          # batch
S = 8          # sequence length
D = 32         # model_dim
H = 4          # attention heads
DH = D // H    # head dim
F = 64         # dim_feedforward
EPS = 1e-5     # LayerNorm eps (PyTorch default)

BS = B * S                  # 16 rows after folding batch into rows
R = H * BS                  # 64 rows after stacking heads along rows
NEG = -1e30
SCALE = 1.0 / float(DH) ** 0.5

# ---- merged parameter-slab layout (one lane-dense (P_ROWS, 128) f32 slab) ----
QKW_COLS = 2 * DH + D          # 48 : [ Q(8) | K(8) | V @ Wo (32) ]
R_WSTK = 0                     # (H*D, 48) head-row-stacked projection weights
R_W1 = R_WSTK + H * D          # 128 : (D, F)  FFN first linear
R_W2 = R_W1 + D                # 160 : (F, D)  FFN second linear
R_BST = R_W2 + F               # 224 : (R, 48) per-row projection bias
R_M01 = R_BST + R              # 288 : (R, 128) 0/1 head-block mask for x replication
R_MADD = R_M01 + R             # 352 : (R, R)  additive attention mask (0 / -1e30)
R_VEC = R_MADD + R             # 416 : 8 rows of small vectors
P_ROWS = R_VEC + 8             # 424 (multiple of 8)
P_COLS = 128


# ------------------------------- kernel -------------------------------------
def encoder_block_kernel(x_ref, p_ref, out_ref):
    f32 = jnp.float32
    x = x_ref[...]                                          # (BS, D) f32

    # ---- unpack the single parameter slab (static, aligned slices) ----
    w_stk = p_ref[R_WSTK:R_WSTK + H * D, 0:QKW_COLS]        # (128, 48)
    w_1 = p_ref[R_W1:R_W1 + D, 0:F]                         # (32, 64)
    w_2 = p_ref[R_W2:R_W2 + F, 0:D]                         # (64, 32)
    b_st = p_ref[R_BST:R_BST + R, 0:QKW_COLS]               # (64, 48)
    m01 = p_ref[R_M01:R_M01 + R, 0:H * D]                   # (64, 128)
    m_add = p_ref[R_MADD:R_MADD + R, 0:R]                   # (64, 64)
    bo = p_ref[R_VEC + 0:R_VEC + 1, 0:D]
    g1 = p_ref[R_VEC + 1:R_VEC + 2, 0:D]
    be1 = p_ref[R_VEC + 2:R_VEC + 3, 0:D]
    b_1 = p_ref[R_VEC + 3:R_VEC + 4, 0:F]
    b_2 = p_ref[R_VEC + 4:R_VEC + 5, 0:D]
    g2 = p_ref[R_VEC + 5:R_VEC + 6, 0:D]
    be2 = p_ref[R_VEC + 6:R_VEC + 7, 0:D]

    # ---- head-row-stacked Q / K / (V·Wo) projection --------------------
    # Replicate x into a block-diagonal (R, H*D) operand so ONE matmul against
    # per-head stacked weights produces the projections already head-major in
    # rows (no 8-lane slice+concatenate relayouts).  1/sqrt(DH) is folded into
    # the Q columns and the output projection Wo into the V columns offline.
    x_rep = jnp.concatenate([x] * H, axis=1)                # (BS, H*D)  lane tile
    x_blk = jnp.concatenate([x_rep] * H, axis=0) * m01      # (R, H*D)  block-diag
    qkv = jnp.dot(x_blk, w_stk, preferred_element_type=f32) + b_st     # (R, 48)
    q_st = qkv[:, 0:DH]                                     # (R, DH) scale pre-folded
    k_st = qkv[:, DH:2 * DH]                                # (R, DH)
    vw_st = qkv[:, 2 * DH:QKW_COLS]                         # (R, D) already x Wo

    # ---- one block-masked attention over all (batch, head) groups ------
    s = jax.lax.dot_general(q_st, k_st, (((1,), (1,)), ((), ())),
                            preferred_element_type=f32) + m_add        # (R, R)
    s = s - jnp.max(s, axis=-1, keepdims=True)
    p = jnp.exp(s)
    p = p * pl.reciprocal(jnp.sum(p, axis=-1, keepdims=True), approx=False)

    t = jnp.dot(p, vw_st, preferred_element_type=f32)                  # (R, D)
    # heads are stacked along rows; sum the BS-row blocks to finish the
    # (already Wo-projected) head combination -> (BS, D)
    attn = (t[0:BS, :] + t[BS:2 * BS, :]
            + t[2 * BS:3 * BS, :] + t[3 * BS:4 * BS, :] + bo)

    # ---- residual + LayerNorm1 (dropout = identity in eval) ------------
    inv_d = 1.0 / D
    h1 = x + attn
    mu1 = jnp.sum(h1, axis=-1, keepdims=True) * inv_d        # two independent
    ms1 = jnp.sum(h1 * h1, axis=-1, keepdims=True) * inv_d   # lane reductions
    h1n = (h1 - mu1) * jax.lax.rsqrt(ms1 - mu1 * mu1 + EPS) * g1 + be1

    # ---- feed-forward: Linear -> ReLU -> Linear -------------------------
    f = jnp.maximum(jnp.dot(h1n, w_1, preferred_element_type=f32) + b_1, 0.0)
    f = jnp.dot(f, w_2, preferred_element_type=f32) + b_2

    # ---- residual + LayerNorm2 ------------------------------------------
    h2 = h1n + f
    mu2 = jnp.sum(h2, axis=-1, keepdims=True) * inv_d
    ms2 = jnp.sum(h2 * h2, axis=-1, keepdims=True) * inv_d
    y = (h2 - mu2) * jax.lax.rsqrt(ms2 - mu2 * mu2 + EPS) * g2 + be2

    out_ref[...] = y.astype(out_ref.dtype)


# --------------------------- parameter packing --------------------------------
def pack_params(params):
    """Pack all weights into ONE lane-dense (P_ROWS, 128) f32 slab.

    Called ONCE (outside the per-call hot path).  Also precomputes the
    block-diagonal masks, folds 1/sqrt(DH) into Q and folds Wo (and its use of
    the V bias) into the V projection columns.
    """
    (wq, bq, wk, bk, wv, bv, wo, bo,
     g1, be1, w1, b1, w2, b2, g2, be2) = params

    slab = jnp.zeros((P_ROWS, P_COLS), jnp.float32)

    # head-row-stacked projection weights: [ Wq*scale | Wk | Wv @ Wo ] per head
    for h in range(H):
        r0 = R_WSTK + h * D
        slab = slab.at[r0:r0 + D, 0:DH].set(wq[h] * SCALE)
        slab = slab.at[r0:r0 + D, DH:2 * DH].set(wk[h])
        slab = slab.at[r0:r0 + D, 2 * DH:QKW_COLS].set(wv[h] @ wo[h])

    slab = slab.at[R_W1:R_W1 + D, 0:F].set(w1)
    slab = slab.at[R_W2:R_W2 + F, 0:D].set(w2)

    # per-row projection bias (broadcast within each head's BS-row block)
    b_head = jnp.concatenate(
        [bq.reshape(H, DH) * SCALE,
         bk.reshape(H, DH),
         jnp.einsum("hd,hde->he", bv.reshape(H, DH), wo)], axis=1)     # (H, 48)
    slab = slab.at[R_BST:R_BST + R, 0:QKW_COLS].set(jnp.repeat(b_head, BS, axis=0))

    # 0/1 head-block mask for the block-diagonal x replication
    rr = jnp.arange(R)[:, None] // BS
    cc = jnp.arange(H * D)[None, :] // D
    slab = slab.at[R_M01:R_M01 + R, 0:H * D].set((rr == cc).astype(jnp.float32))

    # additive attention mask: valid only within the same (head, batch) group
    ra = jnp.arange(R)[:, None] // S
    ca = jnp.arange(R)[None, :] // S
    slab = slab.at[R_MADD:R_MADD + R, 0:R].set(
        jnp.where(ra == ca, 0.0, NEG).astype(jnp.float32))

    # small vectors, one per row
    vec_rows = [(bo.reshape(1, D), D), (g1.reshape(1, D), D),
                (be1.reshape(1, D), D), (b1.reshape(1, F), F),
                (b2.reshape(1, D), D), (g2.reshape(1, D), D),
                (be2.reshape(1, D), D)]
    for i, (v, n) in enumerate(vec_rows):
        slab = slab.at[R_VEC + i:R_VEC + i + 1, 0:n].set(v)
    return slab


# ------------------------------- wrapper -------------------------------------
@jax.jit
def encoder_block(x, slab):
    x2 = x.reshape(BS, D)                       # fold batch into the row dim
    out = pl.pallas_call(
        encoder_block_kernel,
        out_shape=jax.ShapeDtypeStruct((BS, D), x.dtype),
        grid_spec=pltpu.PrefetchScalarGridSpec(
            num_scalar_prefetch=0,
            grid=(1,),                          # single pipeline step
            in_specs=[
                pl.BlockSpec((BS, D), lambda i: (0, 0)),
                pl.BlockSpec((P_ROWS, P_COLS), lambda i: (0, 0)),
            ],
            out_specs=pl.BlockSpec((BS, D), lambda i: (0, 0)),
        ),
        compiler_params=pltpu.CompilerParams(
            dimension_semantics=("arbitrary",)),
    )(x2, slab)
    return out.reshape(B, S, D)


# ---------------------------- pure-JAX reference -----------------------------
def encoder_block_ref(x, params):
    (wq, bq, wk, bk, wv, bv, wo, bo,
     g1, be1, w1, b1, w2, b2, g2, be2) = params

    def ln(h, g, b):
        mu = jnp.mean(h, -1, keepdims=True)
        var = jnp.mean((h - mu) ** 2, -1, keepdims=True)
        return (h - mu) * jax.lax.rsqrt(var + EPS) * g + b

    q = jnp.einsum("bsd,hde->bhse", x, wq) + bq[None, :, 0, None, :]
    k = jnp.einsum("bsd,hde->bhse", x, wk) + bk[None, :, 0, None, :]
    v = jnp.einsum("bsd,hde->bhse", x, wv) + bv[None, :, 0, None, :]
    s = jnp.einsum("bhqe,bhke->bhqk", q, k) * SCALE
    p = jax.nn.softmax(s, axis=-1)
    o = jnp.einsum("bhqk,bhke->bhqe", p, v)
    attn = jnp.einsum("bhse,hed->bsd", o, wo) + bo[0]

    h1 = ln(x + attn, g1[0], be1[0])
    f = jnp.maximum(h1 @ w1 + b1[0], 0.0) @ w2 + b2[0]
    return ln(h1 + f, g2[0], be2[0])


# --------------------------------- main ---------------------------------------
if __name__ == "__main__":
    key = jax.random.PRNGKey(0)
    keys = jax.random.split(key, 12)

    x = jax.random.normal(keys[0], (B, S, D), jnp.float32)

    sc = 0.1
    wq = sc * jax.random.normal(keys[1], (H, D, DH), jnp.float32)
    wk = sc * jax.random.normal(keys[2], (H, D, DH), jnp.float32)
    wv = sc * jax.random.normal(keys[3], (H, D, DH), jnp.float32)
    wo = sc * jax.random.normal(keys[4], (H, DH, D), jnp.float32)
    bq = sc * jax.random.normal(keys[5], (H, 1, DH), jnp.float32)
    bk = sc * jax.random.normal(keys[6], (H, 1, DH), jnp.float32)
    bv = sc * jax.random.normal(keys[7], (H, 1, DH), jnp.float32)
    bo = sc * jax.random.normal(keys[8], (1, D), jnp.float32)

    g1 = jnp.ones((1, D), jnp.float32)
    be1 = jnp.zeros((1, D), jnp.float32)
    g2 = jnp.ones((1, D), jnp.float32)
    be2 = jnp.zeros((1, D), jnp.float32)

    w1 = sc * jax.random.normal(keys[9], (D, F), jnp.float32)
    b1 = sc * jax.random.normal(keys[10], (1, F), jnp.float32)
    w2 = sc * jax.random.normal(keys[11], (F, D), jnp.float32)
    b2 = jnp.zeros((1, D), jnp.float32)

    params = (wq, bq, wk, bk, wv, bv, wo, bo,
              g1, be1, w1, b1, w2, b2, g2, be2)

    # Parameter packing hoisted out of the hot path: built once, reused for
    # every forward call of the jitted wrapper.
    slab = jax.block_until_ready(pack_params(params))

    out = encoder_block(x, slab)
    out = jax.block_until_ready(out)

    ref = encoder_block_ref(x, params)
    assert out.shape == (B, S, D)
    # f32 throughout + exact softmax reciprocal: agreement is ~1e-5; assert a
    # comfortable 2e-4.
    assert jnp.allclose(out, ref, atol=2e-4, rtol=2e-4), (
        float(jnp.max(jnp.abs(out - ref))))

    print("KERNEL_OK")
</pallas_src>

<mosaic_0001>
module attributes {stable_mosaic.version = 11 : i64} {
  func.func @encoder_block_kernel(%arg0: i32, %arg1: memref<16x32xf32, #tpu.memory_space<vmem>>, %arg2: memref<424x128xf32, #tpu.memory_space<vmem>>, %arg3: memref<16x32xf32, #tpu.memory_space<vmem>>) attributes {dimension_semantics = [#tpu.dimension_semantics<arbitrary>], iteration_bounds = array<i64: 1>, scalar_prefetch = 0 : i64, scratch_operands = 0 : i64, tpu.core_type = #tpu.core_type<tc>, window_params = [{pipeline_mode = #tpu.pipeline_mode<synchronous>, transform_indices = @transform_0, window_bounds = array<i64: 16, 32>}, {pipeline_mode = #tpu.pipeline_mode<synchronous>, transform_indices = @transform_1, window_bounds = array<i64: 424, 128>}, {pipeline_mode = #tpu.pipeline_mode<synchronous>, transform_indices = @transform_2, window_bounds = array<i64: 16, 32>}]} {
    %c0 = arith.constant 0 : index
    %c0_0 = arith.constant 0 : index
    %0 = vector.load %arg1[%c0, %c0_0] : memref<16x32xf32, #tpu.memory_space<vmem>>, vector<16x32xf32>
    %c0_1 = arith.constant 0 : index
    %c0_2 = arith.constant 0 : index
    %1 = vector.load %arg2[%c0_1, %c0_2] : memref<424x128xf32, #tpu.memory_space<vmem>>, vector<128x48xf32>
    %c128 = arith.constant 128 : index
    %c0_3 = arith.constant 0 : index
    %2 = vector.load %arg2[%c128, %c0_3] : memref<424x128xf32, #tpu.memory_space<vmem>>, vector<32x64xf32>
    %c160 = arith.constant 160 : index
    %c0_4 = arith.constant 0 : index
    %3 = vector.load %arg2[%c160, %c0_4] : memref<424x128xf32, #tpu.memory_space<vmem>>, vector<64x32xf32>
    %c224 = arith.constant 224 : index
    %c0_5 = arith.constant 0 : index
    %4 = vector.load %arg2[%c224, %c0_5] : memref<424x128xf32, #tpu.memory_space<vmem>>, vector<64x48xf32>
    %c288 = arith.constant 288 : index
    %c0_6 = arith.constant 0 : index
    %5 = vector.load %arg2[%c288, %c0_6] : memref<424x128xf32, #tpu.memory_space<vmem>>, vector<64x128xf32>
    %c352 = arith.constant 352 : index
    %c0_7 = arith.constant 0 : index
    %6 = vector.load %arg2[%c352, %c0_7] : memref<424x128xf32, #tpu.memory_space<vmem>>, vector<64x64xf32>
    %c416 = arith.constant 416 : index
    %c0_8 = arith.constant 0 : index
    %7 = vector.load %arg2[%c416, %c0_8] : memref<424x128xf32, #tpu.memory_space<vmem>>, vector<1x32xf32>
    %c417 = arith.constant 417 : index
    %c0_9 = arith.constant 0 : index
    %8 = vector.load %arg2[%c417, %c0_9] : memref<424x128xf32, #tpu.memory_space<vmem>>, vector<1x32xf32>
    %c418 = arith.constant 418 : index
    %c0_10 = arith.constant 0 : index
    %9 = vector.load %arg2[%c418, %c0_10] : memref<424x128xf32, #tpu.memory_space<vmem>>, vector<1x32xf32>
    %c419 = arith.constant 419 : index
    %c0_11 = arith.constant 0 : index
    %10 = vector.load %arg2[%c419, %c0_11] : memref<424x128xf32, #tpu.memory_space<vmem>>, vector<1x64xf32>
    %c420 = arith.constant 420 : index
    %c0_12 = arith.constant 0 : index
    %11 = vector.load %arg2[%c420, %c0_12] : memref<424x128xf32, #tpu.memory_space<vmem>>, vector<1x32xf32>
    %c421 = arith.constant 421 : index
    %c0_13 = arith.constant 0 : index
    %12 = vector.load %arg2[%c421, %c0_13] : memref<424x128xf32, #tpu.memory_space<vmem>>, vector<1x32xf32>
    %c422 = arith.constant 422 : index
    %c0_14 = arith.constant 0 : index
    %13 = vector.load %arg2[%c422, %c0_14] : memref<424x128xf32, #tpu.memory_space<vmem>>, vector<1x32xf32>
    %14 = tpu.concatenate %0, %0, %0, %0 in 1 : vector<16x32xf32>, vector<16x32xf32>, vector<16x32xf32>, vector<16x32xf32> -> vector<16x128xf32>
    %15 = tpu.concatenate %14, %14, %14, %14 in 0 : vector<16x128xf32>, vector<16x128xf32>, vector<16x128xf32>, vector<16x128xf32> -> vector<64x128xf32>
    %16 = arith.mulf %15, %5 : vector<64x128xf32>
    %cst = arith.constant dense<0.000000e+00> : vector<64x48xf32>
    %17 = tpu.matmul %16, %1, %cst {dimension_numbers = #tpu.dot_dimension_numbers<[1], [0], [0], [1], [0, 0, 1, 1], [], []>} : vector<64x128xf32>, vector<128x48xf32>, vector<64x48xf32> -> vector<64x48xf32>
    %18 = arith.addf %17, %4 : vector<64x48xf32>
    %19 = vector.extract_strided_slice %18 {offsets = [0, 0], sizes = [64, 8], strides = [1, 1]} : vector<64x48xf32> to vector<64x8xf32>
    %20 = vector.extract_strided_slice %18 {offsets = [0, 8], sizes = [64, 8], strides = [1, 1]} : vector<64x48xf32> to vector<64x8xf32>
    %21 = vector.extract_strided_slice %18 {offsets = [0, 16], sizes = [64, 32], strides = [1, 1]} : vector<64x48xf32> to vector<64x32xf32>
    %cst_15 = arith.constant dense<0.000000e+00> : vector<64x64xf32>
    %22 = tpu.matmul %19, %20, %cst_15 {dimension_numbers = #tpu.dot_dimension_numbers<[1], [1], [0], [0], [0, 0, 1, 0], [], []>} : vector<64x8xf32>, vector<64x8xf32>, vector<64x64xf32> -> vector<64x64xf32>
    %23 = arith.addf %22, %6 : vector<64x64xf32>
    %cst_16 = arith.constant dense<0xFF800000> : vector<64xf32>
    %24 = vector.multi_reduction <maximumf>, %23, %cst_16 [1] : vector<64x64xf32> to vector<64xf32>
    %25 = vector.shape_cast %24 : vector<64xf32> to vector<64x1xf32>
    %26 = vector.broadcast %25 : vector<64x1xf32> to vector<64x64xf32>
    %27 = arith.subf %23, %26 : vector<64x64xf32>
    %28 = math.exp %27 : vector<64x64xf32>
    %cst_17 = arith.constant dense<0.000000e+00> : vector<64xf32>
    %29 = vector.multi_reduction <add>, %28, %cst_17 [1] : vector<64x64xf32> to vector<64xf32>
    %30 = vector.shape_cast %29 : vector<64xf32> to vector<64x1xf32>
    %31 = tpu.reciprocal %30 : vector<64x1xf32> -> vector<64x1xf32>
    %32 = vector.broadcast %31 : vector<64x1xf32> to vector<64x64xf32>
    %33 = arith.mulf %28, %32 : vector<64x64xf32>
    %cst_18 = arith.constant dense<0.000000e+00> : vector<64x32xf32>
    %34 = tpu.matmul %33, %21, %cst_18 {dimension_numbers = #tpu.dot_dimension_numbers<[1], [0], [0], [1], [0, 0, 1, 1], [], []>} : vector<64x64xf32>, vector<64x32xf32>, vector<64x32xf32> -> vector<64x32xf32>
    %35 = vector.extract_strided_slice %34 {offsets = [0, 0], sizes = [16, 32], strides = [1, 1]} : vector<64x32xf32> to vector<16x32xf32>
    %36 = vector.extract_strided_slice %34 {offsets = [16, 0], sizes = [16, 32], strides = [1, 1]} : vector<64x32xf32> to vector<16x32xf32>
    %37 = arith.addf %35, %36 : vector<16x32xf32>
    %38 = vector.extract_strided_slice %34 {offsets = [32, 0], sizes = [16, 32], strides = [1, 1]} : vector<64x32xf32> to vector<16x32xf32>
    %39 = arith.addf %37, %38 : vector<16x32xf32>
    %40 = vector.extract_strided_slice %34 {offsets = [48, 0], sizes = [16, 32], strides = [1, 1]} : vector<64x32xf32> to vector<16x32xf32>
    %41 = arith.addf %39, %40 : vector<16x32xf32>
    %42 = vector.broadcast %7 : vector<1x32xf32> to vector<16x32xf32>
    %43 = arith.addf %41, %42 : vector<16x32xf32>
    %44 = arith.addf %0, %43 : vector<16x32xf32>
    %cst_19 = arith.constant dense<0.000000e+00> : vector<16xf32>
    %45 = vector.multi_reduction <add>, %44, %cst_19 [1] : vector<16x32xf32> to vector<16xf32>
    %46 = vector.shape_cast %45 : vector<16xf32> to vector<16x1xf32>
    %cst_20 = arith.constant 3.125000e-02 : f32
    %47 = vector.broadcast %cst_20 : f32 to vector<16x1xf32>
    %48 = arith.mulf %46, %47 : vector<16x1xf32>
    %49 = arith.mulf %44, %44 : vector<16x32xf32>
    %cst_21 = arith.constant dense<0.000000e+00> : vector<16xf32>
    %50 = vector.multi_reduction <add>, %49, %cst_21 [1] : vector<16x32xf32> to vector<16xf32>
    %51 = vector.shape_cast %50 : vector<16xf32> to vector<16x1xf32>
    %cst_22 = arith.constant 3.125000e-02 : f32
    %52 = vector.broadcast %cst_22 : f32 to vector<16x1xf32>
    %53 = arith.mulf %51, %52 : vector<16x1xf32>
    %54 = vector.broadcast %48 : vector<16x1xf32> to vector<16x32xf32>
    %55 = arith.subf %44, %54 : vector<16x32xf32>
    %56 = arith.mulf %48, %48 : vector<16x1xf32>
    %57 = arith.subf %53, %56 : vector<16x1xf32>
    %cst_23 = arith.constant 9.99999974E-6 : f32
    %58 = vector.broadcast %cst_23 : f32 to vector<16x1xf32>
    %59 = arith.addf %57, %58 : vector<16x1xf32>
    %60 = math.rsqrt %59 : vector<16x1xf32>
    %61 = vector.broadcast %60 : vector<16x1xf32> to vector<16x32xf32>
    %62 = arith.mulf %55, %61 : vector<16x32xf32>
    %63 = vector.broadcast %8 : vector<1x32xf32> to vector<16x32xf32>
    %64 = arith.mulf %62, %63 : vector<16x32xf32>
    %65 = vector.broadcast %9 : vector<1x32xf32> to vector<16x32xf32>
    %66 = arith.addf %64, %65 : vector<16x32xf32>
    %cst_24 = arith.constant dense<0.000000e+00> : vector<16x64xf32>
    %67 = tpu.matmul %66, %2, %cst_24 {dimension_numbers = #tpu.dot_dimension_numbers<[1], [0], [0], [1], [0, 0, 1, 1], [], []>} : vector<16x32xf32>, vector<32x64xf32>, vector<16x64xf32> -> vector<16x64xf32>
    %68 = vector.broadcast %10 : vector<1x64xf32> to vector<16x64xf32>
    %69 = arith.addf %67, %68 : vector<16x64xf32>
    %cst_25 = arith.constant 0.000000e+00 : f32
    %70 = vector.broadcast %cst_25 : f32 to vector<16x64xf32>
    %71 = arith.maximumf %69, %70 : vector<16x64xf32>
    %cst_26 = arith.constant dense<0.000000e+00> : vector<16x32xf32>
    %72 = tpu.matmul %71, %3, %cst_26 {dimension_numbers = #tpu.dot_dimension_numbers<[1], [0], [0], [1], [0, 0, 1, 1], [], []>} : vector<16x64xf32>, vector<64x32xf32>, vector<16x32xf32> -> vector<16x32xf32>
    %73 = vector.broadcast %11 : vector<1x32xf32> to vector<16x32xf32>
    %74 = arith.addf %72, %73 : vector<16x32xf32>
    %75 = arith.addf %66, %74 : vector<16x32xf32>
    %cst_27 = arith.constant dense<0.000000e+00> : vector<16xf32>
    %76 = vector.multi_reduction <add>, %75, %cst_27 [1] : vector<16x32xf32> to vector<16xf32>
    %77 = vector.shape_cast %76 : vector<16xf32> to vector<16x1xf32>
    %cst_28 = arith.constant 3.125000e-02 : f32
    %78 = vector.broadcast %cst_28 : f32 to vector<16x1xf32>
    %79 = arith.mulf %77, %78 : vector<16x1xf32>
    %80 = arith.mulf %75, %75 : vector<16x32xf32>
    %cst_29 = arith.constant dense<0.000000e+00> : vector<16xf32>
    %81 = vector.multi_reduction <add>, %80, %cst_29 [1] : vector<16x32xf32> to vector<16xf32>
    %82 = vector.shape_cast %81 : vector<16xf32> to vector<16x1xf32>
    %cst_30 = arith.constant 3.125000e-02 : f32
    %83 = vector.broadcast %cst_30 : f32 to vector<16x1xf32>
    %84 = arith.mulf %82, %83 : vector<16x1xf32>
    %85 = vector.broadcast %79 : vector<16x1xf32> to vector<16x32xf32>
    %86 = arith.subf %75, %85 : vector<16x32xf32>
    %87 = arith.mulf %79, %79 : vector<16x1xf32>
    %88 = arith.subf %84, %87 : vector<16x1xf32>
    %cst_31 = arith.constant 9.99999974E-6 : f32
    %89 = vector.broadcast %cst_31 : f32 to vector<16x1xf32>
    %90 = arith.addf %88, %89 : vector<16x1xf32>
    %91 = math.rsqrt %90 : vector<16x1xf32>
    %92 = vector.broadcast %91 : vector<16x1xf32> to vector<16x32xf32>
    %93 = arith.mulf %86, %92 : vector<16x32xf32>
    %94 = vector.broadcast %12 : vector<1x32xf32> to vector<16x32xf32>
    %95 = arith.mulf %93, %94 : vector<16x32xf32>
    %96 = vector.broadcast %13 : vector<1x32xf32> to vector<16x32xf32>
    %97 = arith.addf %95, %96 : vector<16x32xf32>
    %c0_32 = arith.constant 0 : index
    %c0_33 = arith.constant 0 : index
    %98 = vector.load %arg3[%c0_32, %c0_33] : memref<16x32xf32, #tpu.memory_space<vmem>>, vector<16x32xf32>
    tpu.vector_store %arg3[%c0_32, %c0_33], %97 {strides = array<i32>} : memref<16x32xf32, #tpu.memory_space<vmem>>, vector<16x32xf32>,
    return
  }
  func.func @transform_0(%arg0: i32) -> (i32, i32) {
    %c0_i32 = arith.constant 0 : i32
    %c0_i32_0 = arith.constant 0 : i32
    %c0_i32_1 = arith.constant 0 : i32
    return %c0_i32, %c0_i32_0 : i32, i32
  }
  func.func @transform_1(%arg0: i32) -> (i32, i32) {
    %c0_i32 = arith.constant 0 : i32
    %c0_i32_0 = arith.constant 0 : i32
    %c0_i32_1 = arith.constant 0 : i32
    return %c0_i32, %c0_i32_0 : i32, i32
  }
  func.func @transform_2(%arg0: i32) -> (i32, i32) {
    %c0_i32 = arith.constant 0 : i32
    %c0_i32_0 = arith.constant 0 : i32
    %c0_i32_1 = arith.constant 0 : i32
    return %c0_i32, %c0_i32_0 : i32, i32
  }
}

</mosaic_0001>

<bundles_post_ra>
// kernel: encoder_block.1
= control target key start
LH: loop header
LB: loop body
LE: loop exit
PB: predicated region body
PF: predicated region fallthrough
CT: control target
= control target key end

     0   :  { %7 = vsyncpa [#allocation3], 0  ;;  %s1177_s0 = inlined_call_operand.hbm [shape: f32[16,32], index: 0, kind: input, shape index: {}]   ;;  %s1178_s1 = inlined_call_operand.hbm [shape: f32[424,128], index: 1, kind: input, shape index: {}]   ;;  %s1179_s2 = inlined_call_operand.hbm [shape: f32[16,32], index: 2, kind: output, shape index: {}]  }
   0x1   :  { %8 = vsyncpa [#allocation6], 0 }
   0x2   :  { %9 = vsyncpa [#allocation4], 0  ;;  %s14_s11 = sshll.u32 %s1177_s0, 4  ;;  %s966_s12 = smov [#allocation2]   ;;  %s15_s11 = int_to_ptr.hbm [resolvable:$true] %s14_s11 }
   0x3   :  { %s16_s13 = sshll.u32 %s966_s12, 4  ;;  %s27_s16 = sshll.u32 %s1178_s1, 4  ;;  %s17_s13 = int_to_ptr.vmem [resolvable:$true] %s16_s13  ;;  %s28_s16 = int_to_ptr.hbm [resolvable:$true] %s27_s16 }
   0x4   :  { %s967_s17 = smov 128   ;;  %s968_s18 = smov 8  }
   0x5   :  { %22 = dma.hbm_to_vmem [thread:$0]  %s15_s11, 256, %s17_s13, [#allocation3], %s967_s17, %s967_s17, %s968_s18  }
   0x6   :  { %s969_s19 = smov [#allocation5]  }
   0x7   :  { %s29_s20 = sshll.u32 %s969_s19, 4  ;;  %s30_s20 = int_to_ptr.vmem [resolvable:$true] %s29_s20 }
   0x8   :  { %35 = dma.hbm_to_vmem [thread:$0]  %s28_s16, 6784, %s30_s20, [#allocation6], %s967_s17, %s967_s17, %s968_s18  }
   0x9   :  { %960 = dma.done.wait [#allocation3], 256  }
   0xa   :  { %961 = vsyncadd [#allocation3], 4294967040 }
   0xb   :  { %962 = dma.done.wait [#allocation6], 6784  }
   0xc   :  { %963 = vsyncadd [#allocation6], 4294960512  ;;  %v1003_v0 = vld [vmem:[#allocation2] sm:$0xff]  ;;  %v61_v1 = vld [vmem:[#allocation5 + $0x78] sm:$0xff]  ;;  %s970_s0 = smov 96   ;;  %s971_s1 = smov 32  }
   0xd   :  { %119 = vrot.lane.b32.xlu1 %v1003_v0, %s970_s0  ;;  %107 = vrot.lane.b32.xlu0 %v1003_v0, %s971_s1  ;;  %v1007_v2 = vld [vmem:[#allocation2 + $0x8] sm:$0xff]  ;;  %v60_v3 = vld [vmem:[#allocation5 + $0x70] sm:$0xff]  ;;  %s972_s21 = smov 64   ;;  %v59_v4 = vld [vmem:[#allocation5 + $0x68] sm:$0xff]  ;;  %vm125_vm0 = vcmask 261120   ;;  %vm128_vm1 = vcmask 523264  }
   0xe   :  { %115 = vrot.lane.b32.xlu2 %v1007_v2, %s972_s21  ;;  %142 = vmatpush.msra.mxu0 %v61_v1  ;;  %v58_v5 = vld [vmem:[#allocation5 + $0x60] sm:$0xff]  ;;  %v57_v6 = vld [vmem:[#allocation5 + $0x58] sm:$0xff]  ;;  %v56_v7 = vld [vmem:[#allocation5 + $0x50] sm:$0xff]  ;;  %vm131_vm2 = vcmask 785408   ;;  %s973_s22 = smov 120   ;;  %vm207_vm3 = vcmask 64512  }
   0xf   :  { %795 = vmatpush.msra.mxu3 %v61_v1  ;;  %v55_v8 = vld [vmem:[#allocation5 + $0x48] sm:$0xff]  ;;  %v54_v9 = vld [vmem:[#allocation5 + $0x40] sm:$0xff]  ;;  %v53_v10 = vld [vmem:[#allocation5 + $0x38] sm:$0xff]  ;;  %s974_s23 = smov 112   ;;  %s975_s24 = smov [#allocation7]  }
  0x10   :  { %143 = vmatpush.msra.mxu0 %v60_v3  ;;  %v52_v11 = vld [vmem:[#allocation5 + $0x30] sm:$0xff]  ;;  %v51_v12 = vld [vmem:[#allocation5 + $0x28] sm:$0xff]  ;;  %v50_v13 = vld [vmem:[#allocation5 + $0x20] sm:$0xff]  ;;  %s751_s25 = sshll.u32 %s975_s24, 4  ;;  %s753_s28 = sshll.u32 %s1179_s2, 4  ;;  %s752_s25 = int_to_ptr.vmem [resolvable:$true] %s751_s25  ;;  %s754_s28 = int_to_ptr.hbm [resolvable:$true] %s753_s28 }
  0x11   :  { %796 = vmatpush.msra.mxu3 %v60_v3  ;;  %v49_v14 = vld [vmem:[#allocation5 + $0x18] sm:$0xff]  ;;  %v48_v15 = vld [vmem:[#allocation5 + $0x10] sm:$0xff]  ;;  %v47_v16 = vld [vmem:[#allocation5 + $0x8] sm:$0xff] }
  0x12   :  { %144 = vmatpush.msra.mxu0 %v59_v4  ;;  %v46_v17 = vld [vmem:[#allocation5] sm:$0xff]  ;;  %v89_v28 = vld [vmem:[#allocation5 + $0x158] sm:$0xff]  ;;  %v83_v34 = vld [vmem:[#allocation5 + $0x128] sm:$0xff] }
  0x13   :  { %797 = vmatpush.msra.mxu3 %v59_v4  ;;  %v82_v25 = vld [vmem:[#allocation5 + $0x120] sm:$0xff]  ;;  %v84_v36 = vld [vmem:[#allocation5 + $0x130] sm:$0xff]  ;;  %v85_v38 = vld [vmem:[#allocation5 + $0x138] sm:$0xff] }
  0x14   :  { %145 = vmatpush.msra.mxu0 %v58_v5  ;;  %v86_v40 = vld [vmem:[#allocation5 + $0x140] sm:$0xff]  ;;  %v87_v42 = vld [vmem:[#allocation5 + $0x148] sm:$0xff]  ;;  %v88_v44 = vld [vmem:[#allocation5 + $0x150] sm:$0xff] }
  0x15   :  { %109 = vrot.lane.b32.xlu1 %v1007_v2, %s971_s1  ;;  %113 = vrot.lane.b32.xlu0 %v1003_v0, %s972_s21  ;;  %v81_v47 = vld [vmem:[#allocation5 + $0x118] sm:$0xff]  ;;  %v78_v53 = vld [vmem:[#allocation5 + $0x100] sm:$0xff]  ;;  %v75_v56 = vld [vmem:[#allocation5 + $0xe8] sm:$0xff] }
  0x16   :  { %121 = vrot.lane.b32.xlu2 %v1007_v2, %s970_s0  ;;  %798 = vmatpush.msra.mxu3 %v58_v5  ;;  %v79_v57 = vld [vmem:[#allocation5 + $0x108] sm:$0xff]  ;;  %v76_v61 = vld [vmem:[#allocation5 + $0xf0] sm:$0xff]  ;;  %v77_v4 = vld [vmem:[#allocation5 + $0xf8] sm:$0xff] }
  0x17   :  { %146 = vmatpush.msra.mxu0 %v57_v6  ;;  %v80_v62 = vld [vmem:[#allocation5 + $0x110] sm:$0xff] }
  0x18   :  { %799 = vmatpush.msra.mxu3 %v57_v6  ;;  %v74_v6 = vld [vmem:[#allocation5 + $0xe0] sm:$0xff] }
  0x19   :  { %147 = vmatpush.msra.mxu0 %v56_v7 }
  0x1a   :  { %800 = vmatpush.msra.mxu3 %v56_v7 }
  0x1b   :  { %148 = vmatpush.msra.mxu0 %v55_v8 }
  0x1c   :  { %801 = vmatpush.msra.mxu3 %v55_v8 }
  0x1d   :  { %149 = vmatpush.msra.mxu0 %v54_v9 }
  0x1e   :  { %802 = vmatpush.msra.mxu3 %v54_v9 }
  0x1f   :  { %150 = vmatpush.msra.mxu0 %v53_v10 }
  0x20   :  { %803 = vmatpush.msra.mxu3 %v53_v10 }
  0x21   :  { %151 = vmatpush.msra.mxu0 %v52_v11 }
  0x22   :  { %804 = vmatpush.msra.mxu3 %v52_v11 }
  0x23   :  { %152 = vmatpush.msra.mxu0 %v51_v12 }
  0x24   :  { %805 = vmatpush.msra.mxu3 %v51_v12 }
  0x25   :  { %153 = vmatpush.msra.mxu0 %v50_v13 }
  0x26   :  { %806 = vmatpush.msra.mxu3 %v50_v13 }
  0x27   :  { %154 = vmatpush.msra.mxu0 %v49_v14 }
  0x28   :  { %807 = vmatpush.msra.mxu3 %v49_v14 }
  0x29   :  { %155 = vmatpush.msra.mxu0 %v48_v15 }
  0x2a   :  { %808 = vmatpush.msra.mxu3 %v48_v15 }
  0x2b   :  { %156 = vmatpush.msra.mxu0 %v47_v16 }
  0x2c   :  { %809 = vmatpush.msra.mxu3 %v47_v16  ;;  %v90_v16 = vld [vmem:[#allocation5 + $0x160] sm:$0xff] }
  0x2d   :  { %157 = vmatpush.msra.mxu0 %v46_v17 }
  0x2e   :  { %810 = vmatpush.msra.mxu3 %v46_v17 }
  0x68   :  { %v116_v18 = vpop.permute.xlu2 %115 }
  0x70   :  { %v122_v21 = vpop.permute.xlu2 %121 }
  0x7f   :  { %v120_v19 = vpop.permute.xlu1 %119  ;;  %v108_v20 = vpop.permute.xlu0 %107 }
  0x80   :  { %v126_v22 = vsel %vm125_vm0, %v1003_v0, %v108_v20  ;;  %v91_v20 = vld [vmem:[#allocation5 + $0x168] sm:$0xff] }
  0x87   :  { %v110_v23 = vpop.permute.xlu1 %109  ;;  %v114_v24 = vpop.permute.xlu0 %113 }
  0x88   :  { %v127_v26 = vsel %vm125_vm0, %v1007_v2, %v110_v23  ;;  %v129_v27 = vsel %vm128_vm1, %v126_v22, %v114_v24  ;;  %v92_v24 = vld [vmem:[#allocation5 + $0x170] sm:$0xff] }
  0x89   :  { %v132_v29 = vsel %vm131_vm2, %v129_v27, %v120_v19  ;;  %v130_v30 = vsel %vm128_vm1, %v127_v26, %v116_v18 }
  0x8a   :  { %v133_v31 = vsel %vm131_vm2, %v130_v30, %v122_v21  ;;  %v134_v32 = vmul.f32 %v132_v29, %v82_v25  ;;  %v136_v37 = vmul.f32 %v132_v29, %v84_v36  ;;  %v138_v41 = vmul.f32 %v132_v29, %v86_v40  ;;  %v95_v36 = vld [vmem:[#allocation5 + $0x188] sm:$0xff]  ;;  %v96_v40 = vld [vmem:[#allocation5 + $0x190] sm:$0xff] }
  0x8b   :  { %v141_v33 = vmul.f32 %v133_v31, %v89_v28  ;;  %v135_v35 = vmul.f32 %v133_v31, %v83_v34  ;;  %v137_v39 = vmul.f32 %v133_v31, %v85_v38  ;;  %v139_v43 = vmul.f32 %v133_v31, %v87_v42  ;;  %v93_v28 = vld [vmem:[#allocation5 + $0x178] sm:$0xff] }
  0x8c   :  { %158 = vmatmul.f32.vlgmr.msra.gmra.mxu0 %v134_v32  ;;  %v140_v45 = vmul.f32 %v132_v29, %v88_v44  ;;  %v94_v32 = vld [vmem:[#allocation5 + $0x180] sm:$0xff] }
  0x8d   :  { %179 = vmatmul.f32.vlgmr.msra.gmra.mxu3 %v141_v33 }
  0x94   :  { %161 = vmatmul.f32.gmra.mxu0 %v135_v35 }
  0x9c   :  { %164 = vmatmul.f32.gmra.mxu0 %v136_v37 }
  0xa4   :  { %167 = vmatmul.f32.gmra.mxu0 %v137_v39 }
  0xac   :  { %170 = vmatmul.f32.gmra.mxu0 %v138_v41 }
  0xb4   :  { %173 = vmatmul.f32.gmra.mxu0 %v139_v43 }
  0xbc   :  { %176 = vmatmul.f32.gmra.mxu0 %v140_v45 }
 0x109   :  { %v159_v46 = vpop.f32.mrf.mxu0 }
 0x10a   :  { %v1040_v7 = vadd.f32 %v159_v46, %v74_v6  ;;  %v97_v46 = vld [vmem:[#allocation5 + $0x198] sm:$0xff] }
 0x110   :  { %v180_v48 = vpop.f32.mrf.mxu3 }
 0x111   :  { %v1019_v49 = vadd.f32 %v180_v48, %v81_v47  ;;  %v162_v50 = vpop.f32.mrf.mxu0 }
 0x112   :  { %v1025_v59 = vadd.f32 %v162_v50, %v75_v56 }
 0x113   :  { %205 = vrot.lane.b32.xlu0 %v1019_v49, %s973_s22 }
 0x119   :  { %v165_v51 = vpop.f32.mrf.mxu0 }
 0x11a   :  { %v1031_v1 = vadd.f32 %v165_v51, %v76_v61 }
 0x121   :  { %v168_v52 = vpop.f32.mrf.mxu0 }
 0x122   :  { %v1037_v5 = vadd.f32 %v168_v52, %v77_v4 }
 0x129   :  { %v171_v54 = vpop.f32.mrf.mxu0 }
 0x12a   :  { %v1022_v55 = vadd.f32 %v171_v54, %v78_v53  ;;  %v836_v54 = vpack.i.bf16 %v1040_v7, %v1025_v59 }
 0x12c   :  { %199 = vrot.lane.b32.xlu0 %v1022_v55, %s973_s22 }
 0x131   :  { %v174_v58 = vpop.f32.mrf.mxu0 }
 0x132   :  { %v1027_v60 = vadd.f32 %v174_v58, %v79_v57 }
 0x134   :  { %201 = vrot.lane.b32.xlu2 %v1027_v60, %s973_s22  ;;  %193 = vrot.lane.b32.xlu0 %v1025_v59, %s973_s22  ;;  %v826_v44 = vpack.i.bf16 %v1022_v55, %v1027_v60 }
 0x139   :  { %v177_v63 = vpop.f32.mrf.mxu0 }
 0x13a   :  { %v1033_v3 = vadd.f32 %v177_v63, %v80_v62 }
 0x13c   :  { %203 = vrot.lane.b32.xlu1 %v1033_v3, %s973_s22  ;;  %195 = vrot.lane.b32.xlu2 %v1031_v1, %s973_s22  ;;  %v821_v45 = vpack.i.bf16 %v1033_v3, %v1019_v49 }
 0x144   :  { %197 = vrot.lane.b32.xlu1 %v1037_v5, %s973_s22 }
 0x14c   :  { %191 = vrot.lane.b32.xlu1 %v1040_v7, %s973_s22 }
 0x185   :  { %v206_v8 = vpop.permute.xlu0 %205 }
 0x186   :  { %767 = vmatpush.xpose.msk.msra.mxu1 %vm207_vm3, %v206_v8 }
 0x18e   :  { %v202_v10 = vpop.permute.xlu2 %201 }
 0x196   :  { %v196_v13 = vpop.permute.xlu2 %195 }
 0x19e   :  { %v200_v11 = vpop.permute.xlu0 %199 }
 0x1a6   :  { %v194_v14 = vpop.permute.xlu0 %193 }
 0x1ae   :  { %v204_v9 = vpop.permute.xlu1 %203 }
 0x1af   :  { %768 = vmatpush.xpose.msk.msra.mxu1 %vm207_vm3, %v204_v9 }
 0x1b3   :  { %769 = vmatpush.xpose.msk.msra.mxu1 %vm207_vm3, %v202_v10 }
 0x1b6   :  { %v198_v12 = vpop.permute.xlu1 %197 }
 0x1b7   :  { %770 = vmatpush.xpose.msk.msra.mxu1 %vm207_vm3, %v200_v11 }
 0x1bb   :  { %771 = vmatpush.xpose.msk.msra.mxu1 %vm207_vm3, %v198_v12  ;;  %v831_v12 = vpack.i.bf16 %v1031_v1, %v1037_v5 }
 0x1be   :  { %v192_v15 = vpop.permute.xlu1 %191 }
 0x1bf   :  { %772 = vmatpush.xpose.msk.msra.mxu1 %vm207_vm3, %v196_v13 }
 0x1c3   :  { %773 = vmatpush.xpose.msk.msra.mxu1 %vm207_vm3, %v194_v14 }
 0x1c7   :  { %774 = vmatpush.xpose.msk.msra.mxu1 %vm207_vm3, %v192_v15 }
 0x1ca   :  { %775 = vmatmul.msk.f32.vlgmr.msra.gmra.mxu1 %vm207_vm3, %v1040_v7 }
 0x1d2   :  { %776 = vmatmul.msk.f32.gmra.mxu1 %vm207_vm3, %v1025_v59 }
 0x1da   :  { %777 = vmatmul.msk.f32.gmra.mxu1 %vm207_vm3, %v1031_v1 }
 0x1e2   :  { %778 = vmatmul.msk.f32.gmra.mxu1 %vm207_vm3, %v1037_v5 }
 0x1ea   :  { %779 = vmatmul.msk.f32.gmra.mxu1 %vm207_vm3, %v1022_v55 }
 0x1f2   :  { %780 = vmatmul.msk.f32.gmra.mxu1 %vm207_vm3, %v1027_v60 }
 0x1fa   :  { %781 = vmatmul.msk.f32.gmra.mxu1 %vm207_vm3, %v1033_v3 }
 0x202   :  { %782 = vmatmul.msk.f32.gmra.mxu1 %vm207_vm3, %v1019_v49 }
 0x247   :  { %v257_v17 = vpop.f32.mrf.mxu1 }
 0x248   :  { %v258_v18 = vadd.f32 %v257_v17, %v90_v16 }
 0x24a   :  { %v281_v19 = vsel %vm128_vm1, %v258_v18, -inf }
 0x24b   :  { %282 = vmax.xlane.f32.xlu2 %v281_v19 }
 0x24f   :  { %v260_v21 = vpop.f32.mrf.mxu1 }
 0x250   :  { %v261_v22 = vadd.f32 %v260_v21, %v91_v20 }
 0x252   :  { %v284_v23 = vsel %vm128_vm1, %v261_v22, -inf }
 0x253   :  { %285 = vmax.xlane.f32.xlu0 %v284_v23 }
 0x257   :  { %v263_v25 = vpop.f32.mrf.mxu1 }
 0x258   :  { %v264_v26 = vadd.f32 %v263_v25, %v92_v24 }
 0x25a   :  { %v287_v27 = vsel %vm128_vm1, %v264_v26, -inf }
 0x25b   :  { %288 = vmax.xlane.f32.xlu1 %v287_v27 }
 0x25f   :  { %v266_v29 = vpop.f32.mrf.mxu1 }
 0x260   :  { %v267_v30 = vadd.f32 %v266_v29, %v93_v28 }
 0x262   :  { %v290_v31 = vsel %vm128_vm1, %v267_v30, -inf }
 0x263   :  { %291 = vmax.xlane.f32.xlu2 %v290_v31 }
 0x267   :  { %v269_v33 = vpop.f32.mrf.mxu1 }
 0x268   :  { %v1071_v34 = vadd.f32 %v269_v33, %v94_v32 }
 0x26a   :  { %v293_v35 = vsel %vm128_vm1, %v1071_v34, -inf }
 0x26b   :  { %294 = vmax.xlane.f32.xlu2 %v293_v35 }
 0x26f   :  { %v272_v37 = vpop.f32.mrf.mxu1 }
 0x270   :  { %v273_v38 = vadd.f32 %v272_v37, %v95_v36 }
 0x272   :  { %v296_v39 = vsel %vm128_vm1, %v273_v38, -inf }
 0x273   :  { %297 = vmax.xlane.f32.xlu0 %v296_v39 }
 0x277   :  { %v275_v41 = vpop.f32.mrf.mxu1 }
 0x278   :  { %v276_v42 = vadd.f32 %v275_v41, %v96_v40 }
 0x27a   :  { %v299_v43 = vsel %vm128_vm1, %v276_v42, -inf }
 0x27b   :  { %300 = vmax.xlane.f32.xlu1 %v299_v43 }
 0x27f   :  { %v278_v47 = vpop.f32.mrf.mxu1 }
 0x280   :  { %v1083_v48 = vadd.f32 %v278_v47, %v97_v46 }
 0x282   :  { %v302_v50 = vsel %vm128_vm1, %v1083_v48, -inf }
 0x287   :  { %827 = vrot.lane.b32.xlu0 %v826_v44, %s974_s23 }
 0x294   :  { %822 = vrot.lane.b32.xlu1 %v821_v45, %s974_s23 }
 0x2b1   :  { %303 = vmax.xlane.f32.xlu0 %v302_v50 }
 0x2be   :  { %v283_v51 = vpop.xlane.xlu2 %282 }
 0x2bf   :  { %v305_v52 = vsub.f32 %v258_v18, %v283_v51 }
 0x2c1   :  { %v313_v53 = vmul.f32 1.442695, %v305_v52 }
 0x2c3   :  { %848 = vpow2.f32 %v313_v53 }
 0x2c5   :  { %837 = vrot.lane.b32.xlu0 %v836_v54, %s974_s23 }
 0x2c6   :  { %v286_v49 = vpop.xlane.xlu0 %285 }
 0x2c7   :  { %v306_v55 = vsub.f32 %v261_v22, %v286_v49 }
 0x2c9   :  { %v1090_v56 = vpop.eup %848  ;;  %v315_v57 = vmul.f32 1.442695, %v306_v55 }
 0x2ca   :  { %v329_v58 = vsel %vm128_vm1, %v1090_v56, 0.0 }
 0x2cb   :  { %850 = vpow2.f32 %v315_v57  ;;  %330 = vadd.xlane.f32.xlu2 %v329_v58 }
 0x2ce   :  { %v289_v60 = vpop.xlane.xlu1 %288 }
 0x2cf   :  { %v307_v61 = vsub.f32 %v264_v26, %v289_v60 }
 0x2d1   :  { %v1094_v62 = vpop.eup %850  ;;  %v317_v63 = vmul.f32 1.442695, %v307_v61 }
 0x2d2   :  { %v332_v59 = vsel %vm128_vm1, %v1094_v62, 0.0 }
 0x2d3   :  { %852 = vpow2.f32 %v317_v63  ;;  %333 = vadd.xlane.f32.xlu2 %v332_v59 }
 0x2d6   :  { %v292_v4 = vpop.xlane.xlu2 %291 }
 0x2d7   :  { %v308_v7 = vsub.f32 %v267_v30, %v292_v4 }
 0x2d9   :  { %v1098_v3 = vpop.eup %852  ;;  %v319_v8 = vmul.f32 1.442695, %v308_v7 }
 0x2da   :  { %v335_v6 = vsel %vm128_vm1, %v1098_v3, 0.0 }
 0x2db   :  { %336 = vadd.xlane.f32.xlu1 %v335_v6  ;;  %854 = vpow2.f32 %v319_v8 }
 0x2de   :  { %v295_v20 = vpop.xlane.xlu2 %294 }
 0x2df   :  { %v309_v21 = vsub.f32 %v1071_v34, %v295_v20 }
 0x2e1   :  { %v1104_v13 = vpop.eup %854  ;;  %v321_v22 = vmul.f32 1.442695, %v309_v21 }
 0x2e2   :  { %v338_v15 = vsel %vm128_vm1, %v1104_v13, 0.0 }
 0x2e6   :  { %v298_v9 = vpop.xlane.xlu0 %297 }
 0x2e7   :  { %v310_v10 = vsub.f32 %v273_v38, %v298_v9 }
 0x2e9   :  { %v323_v11 = vmul.f32 1.442695, %v310_v10 }
 0x2eb   :  { %856 = vpow2.f32 %v323_v11  ;;  %832 = vrot.lane.b32.xlu2 %v831_v12, %s974_s23 }
 0x2ee   :  { %v301_v14 = vpop.xlane.xlu1 %300 }
 0x2ef   :  { %v311_v16 = vsub.f32 %v276_v42, %v301_v14  ;;  %339 = vadd.xlane.f32.xlu0 %v338_v15 }
 0x2f1   :  { %v1109_v17 = vpop.eup %856  ;;  %v325_v18 = vmul.f32 1.442695, %v311_v16 }
 0x2f2   :  { %v344_v19 = vsel %vm128_vm1, %v1109_v17, 0.0 }
 0x2f3   :  { %858 = vpow2.f32 %v325_v18  ;;  %345 = vadd.xlane.f32.xlu1 %v344_v19 }
 0x2f4   :  { %860 = vpow2.f32 %v321_v22 }
 0x2f9   :  { %v1113_v1 = vpop.eup %858  ;;  %v828_v25 = vpop.permute.xlu0 %827 }
 0x2fa   :  { %v347_v5 = vsel %vm128_vm1, %v1113_v1, 0.0  ;;  %v829_v27 = vunpack.i.l.bf16 %v828_v25  ;;  %v830_v28 = vunpack.i.h.bf16 %v828_v25  ;;  %v1118_v29 = vpop.eup %860 }
 0x2fb   :  { %348 = vadd.xlane.f32.xlu1 %v347_v5  ;;  %v341_v30 = vsel %vm128_vm1, %v1118_v29, 0.0 }
 0x306   :  { %v823_v23 = vpop.permute.xlu1 %822 }
 0x307   :  { %v824_v24 = vunpack.i.l.bf16 %v823_v23  ;;  %v825_v26 = vunpack.i.h.bf16 %v823_v23 }
 0x309   :  { %529 = vmatpush.msra.mxu2 %v824_v24 }
 0x30b   :  { %530 = vmatpush.msra.mxu2 %v825_v26 }
 0x30d   :  { %531 = vmatpush.msra.mxu2 %v829_v27 }
 0x30f   :  { %532 = vmatpush.msra.mxu2 %v830_v28 }
 0x314   :  { %342 = vadd.xlane.f32.xlu2 %v341_v30 }
 0x324   :  { %v304_v31 = vpop.xlane.xlu0 %303 }
 0x325   :  { %v312_v32 = vsub.f32 %v1083_v48, %v304_v31 }
 0x327   :  { %v327_v33 = vmul.f32 1.442695, %v312_v32 }
 0x329   :  { %862 = vpow2.f32 %v327_v33 }
 0x32f   :  { %v1123_v34 = vpop.eup %862 }
 0x330   :  { %v350_v35 = vsel %vm128_vm1, %v1123_v34, 0.0 }
 0x331   :  { %351 = vadd.xlane.f32.xlu0 %v350_v35 }
 0x337   :  { %v838_v51 = vpop.permute.xlu0 %837 }
 0x338   :  { %v839_v57 = vunpack.i.l.bf16 %v838_v51  ;;  %v840_v59 = vunpack.i.h.bf16 %v838_v51 }
 0x33e   :  { %v331_v36 = vpop.xlane.xlu2 %330 }
 0x33f   :  { %864 = vrcp.f32 %v331_v36  ;;  %v364_v44 = vand.u32 2147483648, %v331_v36  ;;  %vm358_vm5 = vweird.f32 %v331_v36  ;;  %v362_v48 = vand.u32 2147483647, %v331_v36 }
 0x341   :  { %v365_v54 = vor.u32 1.1754944e-38, %v364_v44  ;;  %vm363_vm7 = vcmp.eq.f32.partialorder %v362_v48, 8.507059e+37 }
 0x345   :  { %v865_v37 = vpop.eup %864 }
 0x346   :  { %v354_v38 = vmul.f32 %v865_v37, %v331_v36  ;;  %v334_v39 = vpop.xlane.xlu2 %333  ;;  %vm359_vm4 = vweird.f32 %v865_v37 }
 0x347   :  { %866 = vrcp.f32 %v334_v39  ;;  %vm360_vm6 = vmor %vm358_vm5, %vm359_vm4  ;;  %v378_v63 = vand.u32 2147483648, %v334_v39  ;;  %vm372_vm9 = vweird.f32 %v334_v39  ;;  %v376_v7 = vand.u32 2147483647, %v334_v39 }
 0x348   :  { %v355_v40 = vsub.f32 1.0, %v354_v38 }
 0x349   :  { %v379_v10 = vor.u32 1.1754944e-38, %v378_v63  ;;  %vm377_vm11 = vcmp.eq.f32.partialorder %v376_v7, 8.507059e+37 }
 0x34a   :  { %v356_v41 = vmul.f32 %v865_v37, %v355_v40 }
 0x34c   :  { %v357_v42 = vadd.f32 %v865_v37, %v356_v41 }
 0x34d   :  { %v867_v43 = vpop.eup %866 }
 0x34e   :  { %v368_v45 = vmul.f32 %v867_v43, %v334_v39  ;;  %v337_v46 = vpop.xlane.xlu1 %336  ;;  %v833_v47 = vpop.permute.xlu2 %832  ;;  %v361_v53 = vsel %vm360_vm6, %v865_v37, %v357_v42  ;;  %vm373_vm8 = vweird.f32 %v867_v43 }
 0x34f   :  { %868 = vrcp.f32 %v337_v46  ;;  %v834_v50 = vunpack.i.l.bf16 %v833_v47  ;;  %v835_v49 = vunpack.i.h.bf16 %v833_v47  ;;  %v366_v58 = vsel %vm363_vm7, %v365_v54, %v361_v53  ;;  %vm374_vm10 = vmor %vm372_vm9, %vm373_vm8 }
 0x350   :  { %v369_v52 = vsub.f32 1.0, %v368_v45  ;;  %v465_v6 = vmul.f32 %v1090_v56, %v366_v58  ;;  %v392_v15 = vand.u32 2147483648, %v337_v46  ;;  %vm386_vm13 = vweird.f32 %v337_v46 }
 0x351   :  { %533 = vmatpush.msra.mxu2 %v834_v50  ;;  %v390_v18 = vand.u32 2147483647, %v337_v46 }
 0x352   :  { %v370_v55 = vmul.f32 %v867_v43, %v369_v52  ;;  %v393_v19 = vor.u32 1.1754944e-38, %v392_v15 }
 0x353   :  { %534 = vmatpush.msra.mxu2 %v835_v49  ;;  %vm391_vm15 = vcmp.eq.f32.partialorder %v390_v18, 8.507059e+37 }
 0x354   :  { %v371_v60 = vadd.f32 %v867_v43, %v370_v55 }
 0x355   :  { %v869_v61 = vpop.eup %868  ;;  %535 = vmatpush.msra.mxu2 %v839_v57 }
 0x356   :  { %v382_v4 = vmul.f32 %v869_v61, %v337_v46  ;;  %v375_v9 = vsel %vm374_vm10, %v867_v43, %v371_v60  ;;  %vm387_vm12 = vweird.f32 %v869_v61 }
 0x357   :  { %536 = vmatpush.msra.mxu2 %v840_v59  ;;  %v380_v12 = vsel %vm377_vm11, %v379_v10, %v375_v9  ;;  %vm388_vm14 = vmor %vm386_vm13, %vm387_vm12 }
 0x358   :  { %v383_v8 = vsub.f32 1.0, %v382_v4  ;;  %783 = vmatmul.msk.f32.vlgmr.msra.gmra.mxu2 %vm128_vm1, %v465_v6  ;;  %v466_v16 = vmul.f32 %v1094_v62, %v380_v12 }
 0x35a   :  { %v384_v11 = vmul.f32 %v869_v61, %v383_v8 }
 0x35c   :  { %v385_v14 = vadd.f32 %v869_v61, %v384_v11 }
 0x35e   :  { %v389_v56 = vsel %vm388_vm14, %v869_v61, %v385_v14 }
 0x35f   :  { %v394_v20 = vsel %vm391_vm15, %v393_v19, %v389_v56 }
 0x360   :  { %784 = vmatmul.msk.f32.gmra.mxu2 %vm128_vm1, %v466_v16  ;;  %v467_v21 = vmul.f32 %v1098_v3, %v394_v20 }
 0x362   :  { %v340_v5 = vpop.xlane.xlu0 %339 }
 0x363   :  { %870 = vrcp.f32 %v340_v5  ;;  %v406_v25 = vand.u32 2147483648, %v340_v5  ;;  %v404_v62 = vand.u32 2147483647, %v340_v5  ;;  %vm400_vm3 = vweird.f32 %v340_v5 }
 0x365   :  { %v407_v28 = vor.u32 1.1754944e-38, %v406_v25  ;;  %vm405_vm5 = vcmp.eq.f32.partialorder %v404_v62, 8.507059e+37 }
 0x366   :  { %v346_v3 = vpop.xlane.xlu1 %345 }
 0x367   :  { %872 = vrcp.f32 %v346_v3  ;;  %v434_v53 = vand.u32 2147483648, %v346_v3  ;;  %vm428_vm11 = vweird.f32 %v346_v3  ;;  %v432_v55 = vand.u32 2147483647, %v346_v3 }
 0x368   :  { %785 = vmatmul.msk.f32.gmra.mxu2 %vm128_vm1, %v467_v21 }
 0x369   :  { %v871_v22 = vpop.eup %870  ;;  %v435_v60 = vor.u32 1.1754944e-38, %v434_v53  ;;  %vm433_vm13 = vcmp.eq.f32.partialorder %v432_v55, 8.507059e+37 }
 0x36a   :  { %v396_v23 = vmul.f32 %v871_v22, %v340_v5  ;;  %vm401_vm2 = vweird.f32 %v871_v22 }
 0x36b   :  { %vm402_vm4 = vmor %vm400_vm3, %vm401_vm2 }
 0x36c   :  { %v397_v24 = vsub.f32 1.0, %v396_v23 }
 0x36d   :  { %v873_v33 = vpop.eup %872 }
 0x36e   :  { %v398_v26 = vmul.f32 %v871_v22, %v397_v24  ;;  %v349_v35 = vpop.xlane.xlu1 %348  ;;  %v424_v37 = vmul.f32 %v873_v33, %v346_v3  ;;  %vm429_vm9 = vweird.f32 %v873_v33 }
 0x36f   :  { %vm430_vm12 = vmor %vm428_vm11, %vm429_vm9  ;;  %v448_v59 = vand.u32 2147483648, %v349_v35  ;;  %vm442_vm15 = vweird.f32 %v349_v35  ;;  %v446_v6 = vand.u32 2147483647, %v349_v35 }
 0x370   :  { %v399_v27 = vadd.f32 %v871_v22, %v398_v26  ;;  %v425_v39 = vsub.f32 1.0, %v424_v37 }
 0x371   :  { %v449_v7 = vor.u32 1.1754944e-38, %v448_v59  ;;  %vm447_vm3 = vcmp.eq.f32.partialorder %v446_v6, 8.507059e+37  ;;  %v71_v59 = vld [vmem:[#allocation5 + $0xc8] sm:$0xff] }
 0x372   :  { %v403_v30 = vsel %vm402_vm4, %v871_v22, %v399_v27  ;;  %v426_v43 = vmul.f32 %v873_v33, %v425_v39  ;;  %v841_v27 = vld [vmem:[#allocation5 + $0x1a0] ss:$0 sm:$0xff] }
 0x373   :  { %v408_v31 = vsel %vm405_vm5, %v407_v28, %v403_v30 }
 0x374   :  { %v468_v32 = vmul.f32 %v1104_v13, %v408_v31  ;;  %v427_v52 = vadd.f32 %v873_v33, %v426_v43  ;;  %v65_v43 = vld [vmem:[#allocation5 + $0x98] sm:$0xff] }
 0x375   :  { %646 = vmatpush.msrb.mxu3 %v65_v43 }
 0x376   :  { %786 = vmatmul.msk.f32.gmra.mxu2 %vm128_vm1, %v468_v32  ;;  %v431_v58 = vsel %vm430_vm12, %v873_v33, %v427_v52 }
 0x377   :  { %v436_v61 = vsel %vm433_vm13, %v435_v60, %v431_v58  ;;  %v72_v58 = vld [vmem:[#allocation5 + $0xd0] sm:$0xff] }
 0x378   :  { %v470_v4 = vmul.f32 %v1109_v17, %v436_v61 }
 0x387   :  { %v343_v36 = vpop.xlane.xlu2 %342 }
 0x388   :  { %874 = vrcp.f32 %v343_v36  ;;  %v420_v44 = vand.u32 2147483648, %v343_v36  ;;  %v418_v13 = vand.u32 2147483647, %v343_v36  ;;  %vm414_vm7 = vweird.f32 %v343_v36 }
 0x389   :  { %876 = vrcp.f32 %v349_v35 }
 0x38a   :  { %v421_v48 = vor.u32 1.1754944e-38, %v420_v44  ;;  %vm419_vm10 = vcmp.eq.f32.partialorder %v418_v13, 8.507059e+37  ;;  %v64_v44 = vld [vmem:[#allocation5 + $0x90] sm:$0xff] }
 0x38b   :  { %647 = vmatpush.msrb.mxu3 %v64_v44 }
 0x38e   :  { %v875_v38 = vpop.eup %874 }
 0x38f   :  { %v410_v40 = vmul.f32 %v875_v38, %v343_v36  ;;  %v877_v41 = vpop.eup %876  ;;  %vm415_vm6 = vweird.f32 %v875_v38 }
 0x390   :  { %v438_v45 = vmul.f32 %v877_v41, %v349_v35  ;;  %vm416_vm8 = vmor %vm414_vm7, %vm415_vm6  ;;  %vm443_vm14 = vweird.f32 %v877_v41 }
 0x391   :  { %v411_v42 = vsub.f32 1.0, %v410_v40  ;;  %vm444_vm2 = vmor %vm442_vm15, %vm443_vm14 }
 0x392   :  { %v439_v50 = vsub.f32 1.0, %v438_v45  ;;  %v63_v45 = vld [vmem:[#allocation5 + $0x88] sm:$0xff] }
 0x393   :  { %v412_v46 = vmul.f32 %v875_v38, %v411_v42  ;;  %648 = vmatpush.msrb.mxu3 %v63_v45 }
 0x394   :  { %v440_v57 = vmul.f32 %v877_v41, %v439_v50 }
 0x395   :  { %v413_v47 = vadd.f32 %v875_v38, %v412_v46 }
 0x396   :  { %v441_v63 = vadd.f32 %v877_v41, %v440_v57  ;;  %v73_v57 = vld [vmem:[#allocation5 + $0xd8] sm:$0xff] }
 0x397   :  { %v417_v51 = vsel %vm416_vm8, %v875_v38, %v413_v47 }
 0x398   :  { %v422_v54 = vsel %vm419_vm10, %v421_v48, %v417_v51 }
 0x399   :  { %v469_v49 = vmul.f32 %v1118_v29, %v422_v54  ;;  %v445_v29 = vsel %vm444_vm2, %v877_v41, %v441_v63 }
 0x39a   :  { %v450_v9 = vsel %vm447_vm3, %v449_v7, %v445_v29  ;;  %v70_v29 = vld [vmem:[#allocation5 + $0xc0] sm:$0xff] }
 0x39b   :  { %787 = vmatmul.msk.f32.gmra.mxu2 %vm128_vm1, %v469_v49  ;;  %v471_v10 = vmul.f32 %v1113_v1, %v450_v9  ;;  %v69_v9 = vld [vmem:[#allocation5 + $0xb8] sm:$0xff] }
 0x3a3   :  { %788 = vmatmul.msk.f32.gmra.mxu2 %vm128_vm1, %v470_v4 }
 0x3a4   :  { %v352_v8 = vpop.xlane.xlu0 %351 }
 0x3a5   :  { %878 = vrcp.f32 %v352_v8  ;;  %v462_v15 = vand.u32 2147483648, %v352_v8  ;;  %v460_v17 = vand.u32 2147483647, %v352_v8  ;;  %vm456_vm5 = vweird.f32 %v352_v8 }
 0x3a7   :  { %v463_v56 = vor.u32 1.1754944e-38, %v462_v15  ;;  %vm461_vm7 = vcmp.eq.f32.partialorder %v460_v17, 8.507059e+37  ;;  %v843_v17 = vld [vmem:[#allocation5 + $0x1a2] ss:$0 sm:$0xff] }
 0x3ab   :  { %v879_v11 = vpop.eup %878  ;;  %789 = vmatmul.msk.f32.gmra.mxu2 %vm128_vm1, %v471_v10 }
 0x3ac   :  { %v452_v12 = vmul.f32 %v879_v11, %v352_v8  ;;  %vm457_vm4 = vweird.f32 %v879_v11 }
 0x3ad   :  { %vm458_vm6 = vmor %vm456_vm5, %vm457_vm4 }
 0x3ae   :  { %v453_v14 = vsub.f32 1.0, %v452_v12 }
 0x3b0   :  { %v454_v16 = vmul.f32 %v879_v11, %v453_v14  ;;  %v842_v14 = vld [vmem:[#allocation5 + $0x1a1] ss:$0 sm:$0xff] }
 0x3b2   :  { %v455_v18 = vadd.f32 %v879_v11, %v454_v16 }
 0x3b4   :  { %v459_v19 = vsel %vm458_vm6, %v879_v11, %v455_v18 }
 0x3b5   :  { %v464_v5 = vsel %vm461_vm7, %v463_v56, %v459_v19 }
 0x3b6   :  { %v472_v20 = vmul.f32 %v1123_v34, %v464_v5 }
 0x3b8   :  { %790 = vmatmul.msk.f32.gmra.mxu2 %vm128_vm1, %v472_v20 }
 0x3db   :  { %v538_v1 = vpop.f32.mrf.mxu2 }
 0x3e3   :  { %v541_v21 = vpop.f32.mrf.mxu2 }
 0x3eb   :  { %v544_v22 = vpop.f32.mrf.mxu2 }
 0x3ec   :  { %v562_v26 = vadd.f32 %v544_v22, %v538_v1 }
 0x3f9   :  { %v547_v23 = vpop.f32.mrf.mxu2 }
 0x3fa   :  { %v563_v35 = vadd.f32 %v547_v23, %v541_v21 }
 0x41e   :  { %v550_v24 = vpop.f32.mrf.mxu2 }
 0x41f   :  { %v564_v62 = vadd.f32 %v562_v26, %v550_v24 }
 0x426   :  { %v553_v25 = vpop.f32.mrf.mxu2 }
 0x427   :  { %v565_v36 = vadd.f32 %v563_v35, %v553_v25 }
 0x42e   :  { %v556_v28 = vpop.f32.mrf.mxu2 }
 0x42f   :  { %v566_v30 = vadd.f32 %v564_v62, %v556_v28  ;;  %v67_v28 = vld [vmem:[#allocation5 + $0xa8] sm:$0xff] }
 0x431   :  { %v569_v31 = vadd.f32 %v841_v27, %v566_v30  ;;  %v66_v30 = vld [vmem:[#allocation5 + $0xa0] sm:$0xff] }
 0x433   :  { %v1144_v32 = vadd.f32 %v569_v31, %v1003_v0  ;;  %v844_v31 = vld [vmem:[#allocation5 + $0x1a3] ss:$0 sm:$0xff] }
 0x435   :  { %v573_v34 = vsel %vm125_vm0, %v1144_v32, 0.0  ;;  %v581_v3 = vmul.f32 %v1144_v32, %v1144_v32 }
 0x436   :  { %574 = vadd.xlane.f32.xlu2 %v573_v34 }
 0x437   :  { %v583_v33 = vsel %vm125_vm0, %v581_v3, 0.0 }
 0x438   :  { %584 = vadd.xlane.f32.xlu1 %v583_v33 }
 0x43b   :  { %v559_v37 = vpop.f32.mrf.mxu2 }
 0x43c   :  { %v567_v38 = vadd.f32 %v565_v36, %v559_v37  ;;  %v845_v37 = vld [vmem:[#allocation5 + $0x1a4] ss:$0 sm:$0xff] }
 0x43e   :  { %v570_v39 = vadd.f32 %v841_v27, %v567_v38  ;;  %v68_v27 = vld [vmem:[#allocation5 + $0xb0] sm:$0xff] }
 0x440   :  { %v1152_v40 = vadd.f32 %v570_v39, %v1007_v2  ;;  %v62_v2 = vld [vmem:[#allocation5 + $0x80] sm:$0xff] }
 0x441   :  { %649 = vmatpush.msrb.mxu3 %v62_v2 }
 0x442   :  { %v576_v0 = vsel %vm125_vm0, %v1152_v40, 0.0  ;;  %v582_v41 = vmul.f32 %v1152_v40, %v1152_v40 }
 0x443   :  { %577 = vadd.xlane.f32.xlu0 %v576_v0  ;;  %674 = vmatpush.msra.mxu3 %v73_v57 }
 0x444   :  { %v586_v42 = vsel %vm125_vm0, %v582_v41, 0.0 }
 0x445   :  { %587 = vadd.xlane.f32.xlu2 %v586_v42  ;;  %675 = vmatpush.msra.mxu3 %v72_v58 }
 0x447   :  { %676 = vmatpush.msra.mxu3 %v71_v59 }
 0x449   :  { %677 = vmatpush.msra.mxu3 %v70_v29 }
 0x44b   :  { %678 = vmatpush.msra.mxu3 %v69_v9 }
 0x44d   :  { %679 = vmatpush.msra.mxu3 %v68_v27 }
 0x44f   :  { %680 = vmatpush.msra.mxu3 %v67_v28 }
 0x451   :  { %681 = vmatpush.msra.mxu3 %v66_v30 }
 0x4a9   :  { %v575_v46 = vpop.xlane.xlu2 %574 }
 0x4aa   :  { %v579_v13 = vmul.f32 0.03125, %v575_v46 }
 0x4ab   :  { %v585_v47 = vpop.xlane.xlu1 %584 }
 0x4ac   :  { %v593_v48 = vmul.f32 %v579_v13, %v579_v13  ;;  %v589_v50 = vmul.f32 0.03125, %v585_v47  ;;  %v591_v12 = vsub.f32 %v1144_v32, %v579_v13 }
 0x4ae   :  { %v595_v51 = vsub.f32 %v589_v50, %v593_v48 }
 0x4b0   :  { %v597_v52 = vadd.f32 1e-05, %v595_v51 }
 0x4b2   :  { %880 = vrsqrt.f32 %v597_v52  ;;  %vm605_vm9 = vweird.f32 %v597_v52 }
 0x4b6   :  { %v578_v53 = vpop.xlane.xlu0 %577 }
 0x4b7   :  { %v580_v54 = vmul.f32 0.03125, %v578_v53 }
 0x4b8   :  { %v881_v49 = vpop.eup %880  ;;  %v588_v55 = vpop.xlane.xlu2 %587 }
 0x4b9   :  { %v600_v60 = vmul.f32 %v881_v49, %v597_v52  ;;  %v594_v61 = vmul.f32 %v580_v54, %v580_v54  ;;  %v590_v63 = vmul.f32 0.03125, %v588_v55  ;;  %vm606_vm8 = vweird.f32 %v881_v49 }
 0x4ba   :  { %vm607_vm10 = vmor %vm605_vm9, %vm606_vm8  ;;  %v592_v23 = vsub.f32 %v1152_v40, %v580_v54 }
 0x4bb   :  { %v601_v4 = vmul.f32 %v881_v49, %v600_v60  ;;  %v596_v6 = vsub.f32 %v590_v63, %v594_v61 }
 0x4bd   :  { %v602_v7 = vmul.f32 0.5, %v601_v4  ;;  %v598_v8 = vadd.f32 1e-05, %v596_v6 }
 0x4bf   :  { %v603_v10 = vsub.f32 1.5, %v602_v7  ;;  %882 = vrsqrt.f32 %v598_v8  ;;  %vm615_vm12 = vweird.f32 %v598_v8 }
 0x4c1   :  { %v604_v11 = vmul.f32 %v881_v49, %v603_v10  ;;  %v846_v10 = vld [vmem:[#allocation5 + $0x1a5] ss:$0 sm:$0xff] }
 0x4c3   :  { %v608_v15 = vsel %vm607_vm10, %v881_v49, %v604_v11 }
 0x4c4   :  { %v619_v16 = vmul.f32 %v608_v15, %v591_v12 }
 0x4c5   :  { %v883_v18 = vpop.eup %882 }
 0x4c6   :  { %v622_v56 = vmul.f32 %v842_v14, %v619_v16  ;;  %v610_v19 = vmul.f32 %v883_v18, %v598_v8  ;;  %vm616_vm11 = vweird.f32 %v883_v18 }
 0x4c7   :  { %vm617_vm13 = vmor %vm615_vm12, %vm616_vm11 }
 0x4c8   :  { %v625_v5 = vadd.f32 %v843_v17, %v622_v56  ;;  %v611_v20 = vmul.f32 %v883_v18, %v610_v19 }
 0x4ca   :  { %791 = vmatmul.msk.f32.vlgmr.msrb.gmra.mxu3 %vm125_vm0, %v625_v5  ;;  %v612_v1 = vmul.f32 0.5, %v611_v20 }
 0x4cc   :  { %v613_v21 = vsub.f32 1.5, %v612_v1 }
 0x4ce   :  { %v614_v22 = vmul.f32 %v883_v18, %v613_v21 }
 0x4d0   :  { %v618_v24 = vsel %vm617_vm13, %v883_v18, %v614_v22 }
 0x4d1   :  { %v620_v25 = vmul.f32 %v618_v24, %v592_v23 }
 0x4d3   :  { %v623_v26 = vmul.f32 %v842_v14, %v620_v25  ;;  %v847_v14 = vld [vmem:[#allocation5 + $0x1a6] ss:$0 sm:$0xff] }
 0x4d5   :  { %v626_v62 = vadd.f32 %v843_v17, %v623_v26 }
 0x4d7   :  { %792 = vmatmul.msk.f32.gmra.mxu3 %vm125_vm0, %v626_v62 }
 0x54d   :  { %v651_v32 = vpop.f32.mrf.mxu3 }
 0x54e   :  { %v652_v34 = vadd.f32 %v844_v31, %v651_v32 }
 0x550   :  { %v657_v3 = vmax.f32 %v652_v34, 0.0 }
 0x552   :  { %793 = vmatmul.msk.f32.vlgmr.msra.gmra.mxu3 %vm128_vm1, %v657_v3 }
 0x55a   :  { %v654_v33 = vpop.f32.mrf.mxu3 }
 0x55b   :  { %v655_v35 = vadd.f32 %v844_v31, %v654_v33 }
 0x55d   :  { %v658_v36 = vmax.f32 %v655_v35, 0.0 }
 0x55f   :  { %794 = vmatmul.msk.f32.gmra.mxu3 %vm128_vm1, %v658_v36 }
 0x5d5   :  { %v683_v38 = vpop.f32.mrf.mxu3 }
 0x5d6   :  { %v684_v39 = vadd.f32 %v845_v37, %v683_v38 }
 0x5d8   :  { %v689_v40 = vadd.f32 %v684_v39, %v625_v5 }
 0x5da   :  { %v691_v0 = vsel %vm125_vm0, %v689_v40, 0.0  ;;  %v699_v41 = vmul.f32 %v689_v40, %v689_v40 }
 0x5db   :  { %692 = vadd.xlane.f32.xlu1 %v691_v0 }
 0x5dc   :  { %v701_v42 = vsel %vm125_vm0, %v699_v41, 0.0 }
 0x5dd   :  { %702 = vadd.xlane.f32.xlu2 %v701_v42 }
 0x5e2   :  { %v686_v43 = vpop.f32.mrf.mxu3 }
 0x5e3   :  { %v687_v44 = vadd.f32 %v845_v37, %v686_v43 }
 0x5e5   :  { %v690_v45 = vadd.f32 %v687_v44, %v626_v62 }
 0x5e7   :  { %v694_v46 = vsel %vm125_vm0, %v690_v45, 0.0  ;;  %v700_v13 = vmul.f32 %v690_v45, %v690_v45 }
 0x5e8   :  { %695 = vadd.xlane.f32.xlu0 %v694_v46 }
 0x5e9   :  { %v704_v2 = vsel %vm125_vm0, %v700_v13, 0.0 }
 0x5ea   :  { %705 = vadd.xlane.f32.xlu1 %v704_v2 }
 0x64e   :  { %v693_v47 = vpop.xlane.xlu1 %692 }
 0x64f   :  { %v697_v48 = vmul.f32 0.03125, %v693_v47 }
 0x650   :  { %v703_v50 = vpop.xlane.xlu2 %702 }
 0x651   :  { %v711_v51 = vmul.f32 %v697_v48, %v697_v48  ;;  %v707_v52 = vmul.f32 0.03125, %v703_v50  ;;  %v709_v9 = vsub.f32 %v689_v40, %v697_v48 }
 0x653   :  { %v713_v53 = vsub.f32 %v707_v52, %v711_v51 }
 0x655   :  { %v715_v54 = vadd.f32 1e-05, %v713_v53 }
 0x657   :  { %884 = vrsqrt.f32 %v715_v54  ;;  %vm723_vm14 = vweird.f32 %v715_v54 }
 0x65b   :  { %v696_v49 = vpop.xlane.xlu0 %695 }
 0x65c   :  { %v698_v57 = vmul.f32 0.03125, %v696_v49 }
 0x65d   :  { %v885_v55 = vpop.eup %884  ;;  %v706_v60 = vpop.xlane.xlu1 %705 }
 0x65e   :  { %v718_v58 = vmul.f32 %v885_v55, %v715_v54  ;;  %v712_v61 = vmul.f32 %v698_v57, %v698_v57  ;;  %v708_v63 = vmul.f32 0.03125, %v706_v60  ;;  %vm724_vm1 = vweird.f32 %v885_v55 }
 0x65f   :  { %vm725_vm15 = vmor %vm723_vm14, %vm724_vm1  ;;  %v710_v1 = vsub.f32 %v690_v45, %v698_v57 }
 0x660   :  { %v719_v59 = vmul.f32 %v885_v55, %v718_v58  ;;  %v714_v4 = vsub.f32 %v708_v63, %v712_v61 }
 0x662   :  { %v720_v6 = vmul.f32 0.5, %v719_v59  ;;  %v716_v29 = vadd.f32 1e-05, %v714_v4 }
 0x664   :  { %v721_v7 = vsub.f32 1.5, %v720_v6  ;;  %886 = vrsqrt.f32 %v716_v29  ;;  %vm733_vm3 = vweird.f32 %v716_v29 }
 0x666   :  { %v722_v8 = vmul.f32 %v885_v55, %v721_v7 }
 0x668   :  { %v726_v11 = vsel %vm725_vm15, %v885_v55, %v722_v8 }
 0x669   :  { %v737_v12 = vmul.f32 %v726_v11, %v709_v9 }
 0x66a   :  { %v887_v15 = vpop.eup %886 }
 0x66b   :  { %v740_v16 = vmul.f32 %v846_v10, %v737_v12  ;;  %v728_v17 = vmul.f32 %v887_v15, %v716_v29  ;;  %vm734_vm2 = vweird.f32 %v887_v15 }
 0x66c   :  { %vm735_vm4 = vmor %vm733_vm3, %vm734_vm2 }
 0x66d   :  { %v743_v18 = vadd.f32 %v847_v14, %v740_v16  ;;  %v729_v56 = vmul.f32 %v887_v15, %v728_v17 }
 0x66f   :  { %745 = vst.msk [vmem:[#allocation7] sm:$0xff] %vm125_vm0, %v743_v18  ;;  %v730_v19 = vmul.f32 0.5, %v729_v56 }
 0x671   :  { %v731_v5 = vsub.f32 1.5, %v730_v19 }
 0x673   :  { %v732_v20 = vmul.f32 %v887_v15, %v731_v5 }
 0x675   :  { %v736_v21 = vsel %vm735_vm4, %v887_v15, %v732_v20 }
 0x676   :  { %v738_v22 = vmul.f32 %v736_v21, %v710_v1 }
 0x678   :  { %v741_v23 = vmul.f32 %v846_v10, %v738_v22 }
 0x67a   :  { %v744_v24 = vadd.f32 %v847_v14, %v741_v23 }
 0x67c   :  { %746 = vst.msk [vmem:[#allocation7 + $0x8] sm:$0xff] %vm125_vm0, %v744_v24 }
 0x67d   :  { %759 = dma.vmem_to_hbm [thread:$0]  %s752_s25, 256, %s754_s28, [#allocation4], %s967_s17, %s967_s17, %s968_s18  }
 0x67e   :  { %964 = dma.done.wait [#allocation4], 256  }
 0x67f   :  { %965 = vsyncadd [#allocation4], 4294967040 }
 0x680   :  { %764 = vsyncpa [#allocation3], 1 }
 0x681   :  { %765 = vsyncpa [#allocation6], 1 }
 0x682   :  { %766 = vsyncpa [#allocation4], 1 }

</bundles_post_ra>
